<compile_context>
chip_gen: v6e
topology: v6e:2x2x1
jax: 0.10.0
libtpu: 0.0.40
codegen_flags: <defaults>
</compile_context>

<pallas_src>
import math

import jax
import jax.numpy as jnp
from jax.experimental import pallas as pl
from jax.experimental.pallas import tpu as pltpu


def _round_up(x, m):
    return ((x + m - 1) // m) * m


def qnetwork_kernel(x_ref,
                    w1_ref, b1_ref,
                    w2_ref, b2_ref,
                    w3_ref, b3_ref,
                    w4_ref, b4_ref,
                    w5_ref, b5_ref,
                    out_ref):
    """Fused forward for one batch tile: 4 x (Linear+ReLU) + final Linear.

    Weights are bf16 (MXU-native), biases f32; all matmuls accumulate in f32.
    Intermediates never leave vregs/VMEM.
    """
    h = x_ref[...].astype(jnp.bfloat16)

    h = jnp.dot(h, w1_ref[...], preferred_element_type=jnp.float32) + b1_ref[...]
    h = jnp.maximum(h, 0.0).astype(jnp.bfloat16)

    h = jnp.dot(h, w2_ref[...], preferred_element_type=jnp.float32) + b2_ref[...]
    h = jnp.maximum(h, 0.0).astype(jnp.bfloat16)

    h = jnp.dot(h, w3_ref[...], preferred_element_type=jnp.float32) + b3_ref[...]
    h = jnp.maximum(h, 0.0).astype(jnp.bfloat16)

    h = jnp.dot(h, w4_ref[...], preferred_element_type=jnp.float32) + b4_ref[...]
    h = jnp.maximum(h, 0.0).astype(jnp.bfloat16)

    out = jnp.dot(h, w5_ref[...], preferred_element_type=jnp.float32) + b5_ref[...]
    out_ref[...] = out.astype(out_ref.dtype)


def qnetwork_forward(x, params, *, max_tile_b=512):
    """x: [B, ob_dim] f32. params: list of (W [in,out] f32, b [1,out] f32)."""
    batch, ob_dim = x.shape
    hidden = params[0][0].shape[1]
    ac_dim = params[-1][0].shape[1]

    # Lane-dense output width (multiple of 128) -> unmasked stores.
    n_pad = _round_up(max(ac_dim, 128), 128)

    # Batch tiling: big tiles amortize the ~0.35us/step overhead; multiple of 8
    # for sublane alignment. Pad the batch so TILE_B divides it.
    tile_b = min(max_tile_b, _round_up(batch, 8))
    b_pad = _round_up(batch, tile_b)
    if b_pad != batch:
        x = jnp.pad(x, ((0, b_pad - batch), (0, 0)))

    # Flatten params: bf16 weights, f32 biases; zero-pad last layer to n_pad.
    flat = [x]
    for i, (w, b) in enumerate(params):
        w = w.astype(jnp.bfloat16)
        b = b.reshape(1, -1).astype(jnp.float32)
        if i == len(params) - 1 and w.shape[1] != n_pad:
            w = jnp.pad(w, ((0, 0), (0, n_pad - w.shape[1])))
            b = jnp.pad(b, ((0, 0), (0, n_pad - b.shape[1])))
        flat += [w, b]

    grid = (b_pad // tile_b,)

    # x / out tiled over batch; weights+biases whole-array, constant index_map
    # (resident in VMEM across grid iterations).
    in_specs = [pl.BlockSpec((tile_b, ob_dim), lambda i: (i, 0))]
    for arr in flat[1:]:
        in_specs.append(pl.BlockSpec(arr.shape, lambda i: (0, 0)))
    out_spec = pl.BlockSpec((tile_b, n_pad), lambda i: (i, 0))

    flops = 2 * b_pad * (ob_dim * hidden + 3 * hidden * hidden + hidden * n_pad)
    bytes_accessed = (
        b_pad * ob_dim * 4
        + sum(int(a.size) * a.dtype.itemsize for a in flat[1:])
        + b_pad * n_pad * 4
    )

    out = pl.pallas_call(
        qnetwork_kernel,
        grid=grid,
        out_shape=jax.ShapeDtypeStruct((b_pad, n_pad), jnp.float32),
        in_specs=in_specs,
        out_specs=out_spec,
        compiler_params=pltpu.CompilerParams(
            dimension_semantics=("parallel",)),
        cost_estimate=pl.CostEstimate(
            flops=flops, transcendentals=0, bytes_accessed=bytes_accessed),
    )(*flat)

    return out[:batch, :ac_dim]


def init_linear(key, in_dim, out_dim):
    """PyTorch-default-style U(-1/sqrt(in), 1/sqrt(in)) init, f32."""
    kw, kb = jax.random.split(key)
    bound = 1.0 / math.sqrt(in_dim)
    w = jax.random.uniform(kw, (in_dim, out_dim), jnp.float32, -bound, bound)
    b = jax.random.uniform(kb, (1, out_dim), jnp.float32, -bound, bound)
    return w, b


def make_qnetwork_params(key, ob_dim, ac_dim, hidden_dim):
    dims = [(ob_dim, hidden_dim),
            (hidden_dim, hidden_dim),
            (hidden_dim, hidden_dim),
            (hidden_dim, hidden_dim),
            (hidden_dim, ac_dim)]
    keys = jax.random.split(key, len(dims))
    return [init_linear(k, din, dout) for k, (din, dout) in zip(keys, dims)]


def qnetwork_ref(x, params):
    """Pure-JAX f32 reference."""
    h = x
    for i, (w, b) in enumerate(params):
        h = h @ w + b
        if i < len(params) - 1:
            h = jnp.maximum(h, 0.0)
    return h


if __name__ == "__main__":
    # Small, lane-friendly test shapes (spec default hidden_dim=600 also works:
    # weights are whole-array VMEM blocks, so no 128-divisibility requirement).
    batch, ob_dim, ac_dim, hidden_dim = 64, 16, 8, 128

    key = jax.random.PRNGKey(0)
    kx, kp = jax.random.split(key)

    x = jax.random.normal(kx, (batch, ob_dim), jnp.float32)
    params = make_qnetwork_params(kp, ob_dim, ac_dim, hidden_dim)

    out = qnetwork_forward(x, params)
    out = jax.block_until_ready(out)

    ref = qnetwork_ref(x, params)
    assert out.shape == (batch, ac_dim)
    # bf16 matmul inputs with f32 accumulation -> slightly looser tolerance.
    assert jnp.allclose(out, ref, atol=3e-2, rtol=3e-2), \
        float(jnp.max(jnp.abs(out - ref)))

    print("KERNEL_OK")
</pallas_src>

<mosaic_0001>
module attributes {stable_mosaic.version = 11 : i64} {
  func.func @qnetwork_kernel(%arg0: i32, %arg1: memref<64x16xf32, #tpu.memory_space<vmem>>, %arg2: memref<16x128xbf16, #tpu.memory_space<vmem>>, %arg3: memref<1x128xf32, #tpu.memory_space<vmem>>, %arg4: memref<128x128xbf16, #tpu.memory_space<vmem>>, %arg5: memref<1x128xf32, #tpu.memory_space<vmem>>, %arg6: memref<128x128xbf16, #tpu.memory_space<vmem>>, %arg7: memref<1x128xf32, #tpu.memory_space<vmem>>, %arg8: memref<128x128xbf16, #tpu.memory_space<vmem>>, %arg9: memref<1x128xf32, #tpu.memory_space<vmem>>, %arg10: memref<128x128xbf16, #tpu.memory_space<vmem>>, %arg11: memref<1x128xf32, #tpu.memory_space<vmem>>, %arg12: memref<64x128xf32, #tpu.memory_space<vmem>>) attributes {dimension_semantics = [#tpu.dimension_semantics<parallel>], iteration_bounds = array<i64: 1>, scalar_prefetch = 0 : i64, scratch_operands = 0 : i64, tpu.core_type = #tpu.core_type<tc>, window_params = [{transform_indices = @transform_0, window_bounds = array<i64: 64, 16>}, {pipeline_mode = #tpu.pipeline_mode<synchronous>, transform_indices = @transform_1, window_bounds = array<i64: 16, 128>}, {pipeline_mode = #tpu.pipeline_mode<synchronous>, transform_indices = @transform_2, window_bounds = array<i64: 1, 128>}, {pipeline_mode = #tpu.pipeline_mode<synchronous>, transform_indices = @transform_3, window_bounds = array<i64: 128, 128>}, {pipeline_mode = #tpu.pipeline_mode<synchronous>, transform_indices = @transform_4, window_bounds = array<i64: 1, 128>}, {pipeline_mode = #tpu.pipeline_mode<synchronous>, transform_indices = @transform_5, window_bounds = array<i64: 128, 128>}, {pipeline_mode = #tpu.pipeline_mode<synchronous>, transform_indices = @transform_6, window_bounds = array<i64: 1, 128>}, {pipeline_mode = #tpu.pipeline_mode<synchronous>, transform_indices = @transform_7, window_bounds = array<i64: 128, 128>}, {pipeline_mode = #tpu.pipeline_mode<synchronous>, transform_indices = @transform_8, window_bounds = array<i64: 1, 128>}, {pipeline_mode = #tpu.pipeline_mode<synchronous>, transform_indices = @transform_9, window_bounds = array<i64: 128, 128>}, {pipeline_mode = #tpu.pipeline_mode<synchronous>, transform_indices = @transform_10, window_bounds = array<i64: 1, 128>}, {transform_indices = @transform_11, window_bounds = array<i64: 64, 128>}]} {
    %c0 = arith.constant 0 : index
    %c0_0 = arith.constant 0 : index
    %0 = vector.load %arg1[%c0, %c0_0] : memref<64x16xf32, #tpu.memory_space<vmem>>, vector<64x16xf32>
    %1 = arith.truncf %0 : vector<64x16xf32> to vector<64x16xbf16>
    %c0_1 = arith.constant 0 : index
    %c0_2 = arith.constant 0 : index
    %2 = vector.load %arg2[%c0_1, %c0_2] : memref<16x128xbf16, #tpu.memory_space<vmem>>, vector<16x128xbf16>
    %cst = arith.constant dense<0.000000e+00> : vector<64x128xf32>
    %3 = tpu.matmul %1, %2, %cst {dimension_numbers = #tpu.dot_dimension_numbers<[1], [0], [0], [1], [0, 0, 1, 1], [], []>} : vector<64x16xbf16>, vector<16x128xbf16>, vector<64x128xf32> -> vector<64x128xf32>
    %c0_3 = arith.constant 0 : index
    %c0_4 = arith.constant 0 : index
    %4 = vector.load %arg3[%c0_3, %c0_4] : memref<1x128xf32, #tpu.memory_space<vmem>>, vector<1x128xf32>
    %5 = vector.broadcast %4 : vector<1x128xf32> to vector<64x128xf32>
    %6 = arith.addf %3, %5 : vector<64x128xf32>
    %cst_5 = arith.constant 0.000000e+00 : f32
    %7 = vector.broadcast %cst_5 : f32 to vector<64x128xf32>
    %8 = arith.maximumf %6, %7 : vector<64x128xf32>
    %9 = arith.truncf %8 : vector<64x128xf32> to vector<64x128xbf16>
    %c0_6 = arith.constant 0 : index
    %c0_7 = arith.constant 0 : index
    %10 = vector.load %arg4[%c0_6, %c0_7] : memref<128x128xbf16, #tpu.memory_space<vmem>>, vector<128x128xbf16>
    %cst_8 = arith.constant dense<0.000000e+00> : vector<64x128xf32>
    %11 = tpu.matmul %9, %10, %cst_8 {dimension_numbers = #tpu.dot_dimension_numbers<[1], [0], [0], [1], [0, 0, 1, 1], [], []>} : vector<64x128xbf16>, vector<128x128xbf16>, vector<64x128xf32> -> vector<64x128xf32>
    %c0_9 = arith.constant 0 : index
    %c0_10 = arith.constant 0 : index
    %12 = vector.load %arg5[%c0_9, %c0_10] : memref<1x128xf32, #tpu.memory_space<vmem>>, vector<1x128xf32>
    %13 = vector.broadcast %12 : vector<1x128xf32> to vector<64x128xf32>
    %14 = arith.addf %11, %13 : vector<64x128xf32>
    %cst_11 = arith.constant 0.000000e+00 : f32
    %15 = vector.broadcast %cst_11 : f32 to vector<64x128xf32>
    %16 = arith.maximumf %14, %15 : vector<64x128xf32>
    %17 = arith.truncf %16 : vector<64x128xf32> to vector<64x128xbf16>
    %c0_12 = arith.constant 0 : index
    %c0_13 = arith.constant 0 : index
    %18 = vector.load %arg6[%c0_12, %c0_13] : memref<128x128xbf16, #tpu.memory_space<vmem>>, vector<128x128xbf16>
    %cst_14 = arith.constant dense<0.000000e+00> : vector<64x128xf32>
    %19 = tpu.matmul %17, %18, %cst_14 {dimension_numbers = #tpu.dot_dimension_numbers<[1], [0], [0], [1], [0, 0, 1, 1], [], []>} : vector<64x128xbf16>, vector<128x128xbf16>, vector<64x128xf32> -> vector<64x128xf32>
    %c0_15 = arith.constant 0 : index
    %c0_16 = arith.constant 0 : index
    %20 = vector.load %arg7[%c0_15, %c0_16] : memref<1x128xf32, #tpu.memory_space<vmem>>, vector<1x128xf32>
    %21 = vector.broadcast %20 : vector<1x128xf32> to vector<64x128xf32>
    %22 = arith.addf %19, %21 : vector<64x128xf32>
    %cst_17 = arith.constant 0.000000e+00 : f32
    %23 = vector.broadcast %cst_17 : f32 to vector<64x128xf32>
    %24 = arith.maximumf %22, %23 : vector<64x128xf32>
    %25 = arith.truncf %24 : vector<64x128xf32> to vector<64x128xbf16>
    %c0_18 = arith.constant 0 : index
    %c0_19 = arith.constant 0 : index
    %26 = vector.load %arg8[%c0_18, %c0_19] : memref<128x128xbf16, #tpu.memory_space<vmem>>, vector<128x128xbf16>
    %cst_20 = arith.constant dense<0.000000e+00> : vector<64x128xf32>
    %27 = tpu.matmul %25, %26, %cst_20 {dimension_numbers = #tpu.dot_dimension_numbers<[1], [0], [0], [1], [0, 0, 1, 1], [], []>} : vector<64x128xbf16>, vector<128x128xbf16>, vector<64x128xf32> -> vector<64x128xf32>
    %c0_21 = arith.constant 0 : index
    %c0_22 = arith.constant 0 : index
    %28 = vector.load %arg9[%c0_21, %c0_22] : memref<1x128xf32, #tpu.memory_space<vmem>>, vector<1x128xf32>
    %29 = vector.broadcast %28 : vector<1x128xf32> to vector<64x128xf32>
    %30 = arith.addf %27, %29 : vector<64x128xf32>
    %cst_23 = arith.constant 0.000000e+00 : f32
    %31 = vector.broadcast %cst_23 : f32 to vector<64x128xf32>
    %32 = arith.maximumf %30, %31 : vector<64x128xf32>
    %33 = arith.truncf %32 : vector<64x128xf32> to vector<64x128xbf16>
    %c0_24 = arith.constant 0 : index
    %c0_25 = arith.constant 0 : index
    %34 = vector.load %arg10[%c0_24, %c0_25] : memref<128x128xbf16, #tpu.memory_space<vmem>>, vector<128x128xbf16>
    %cst_26 = arith.constant dense<0.000000e+00> : vector<64x128xf32>
    %35 = tpu.matmul %33, %34, %cst_26 {dimension_numbers = #tpu.dot_dimension_numbers<[1], [0], [0], [1], [0, 0, 1, 1], [], []>} : vector<64x128xbf16>, vector<128x128xbf16>, vector<64x128xf32> -> vector<64x128xf32>
    %c0_27 = arith.constant 0 : index
    %c0_28 = arith.constant 0 : index
    %36 = vector.load %arg11[%c0_27, %c0_28] : memref<1x128xf32, #tpu.memory_space<vmem>>, vector<1x128xf32>
    %37 = vector.broadcast %36 : vector<1x128xf32> to vector<64x128xf32>
    %38 = arith.addf %35, %37 : vector<64x128xf32>
    %c0_29 = arith.constant 0 : index
    %c0_30 = arith.constant 0 : index
    %39 = vector.load %arg12[%c0_29, %c0_30] : memref<64x128xf32, #tpu.memory_space<vmem>>, vector<64x128xf32>
    tpu.vector_store %arg12[%c0_29, %c0_30], %38 {strides = array<i32>} : memref<64x128xf32, #tpu.memory_space<vmem>>, vector<64x128xf32>,
    return
  }
  func.func @transform_0(%arg0: i32) -> (i32, i32) {
    %c0_i32 = arith.constant 0 : i32
    %c0_i32_0 = arith.constant 0 : i32
    return %arg0, %c0_i32 : i32, i32
  }
  func.func @transform_1(%arg0: i32) -> (i32, i32) {
    %c0_i32 = arith.constant 0 : i32
    %c0_i32_0 = arith.constant 0 : i32
    %c0_i32_1 = arith.constant 0 : i32
    return %c0_i32, %c0_i32_0 : i32, i32
  }
  func.func @transform_2(%arg0: i32) -> (i32, i32) {
    %c0_i32 = arith.constant 0 : i32
    %c0_i32_0 = arith.constant 0 : i32
    %c0_i32_1 = arith.constant 0 : i32
    return %c0_i32, %c0_i32_0 : i32, i32
  }
  func.func @transform_3(%arg0: i32) -> (i32, i32) {
    %c0_i32 = arith.constant 0 : i32
    %c0_i32_0 = arith.constant 0 : i32
    %c0_i32_1 = arith.constant 0 : i32
    return %c0_i32, %c0_i32_0 : i32, i32
  }
  func.func @transform_4(%arg0: i32) -> (i32, i32) {
    %c0_i32 = arith.constant 0 : i32
    %c0_i32_0 = arith.constant 0 : i32
    %c0_i32_1 = arith.constant 0 : i32
    return %c0_i32, %c0_i32_0 : i32, i32
  }
  func.func @transform_5(%arg0: i32) -> (i32, i32) {
    %c0_i32 = arith.constant 0 : i32
    %c0_i32_0 = arith.constant 0 : i32
    %c0_i32_1 = arith.constant 0 : i32
    return %c0_i32, %c0_i32_0 : i32, i32
  }
  func.func @transform_6(%arg0: i32) -> (i32, i32) {
    %c0_i32 = arith.constant 0 : i32
    %c0_i32_0 = arith.constant 0 : i32
    %c0_i32_1 = arith.constant 0 : i32
    return %c0_i32, %c0_i32_0 : i32, i32
  }
  func.func @transform_7(%arg0: i32) -> (i32, i32) {
    %c0_i32 = arith.constant 0 : i32
    %c0_i32_0 = arith.constant 0 : i32
    %c0_i32_1 = arith.constant 0 : i32
    return %c0_i32, %c0_i32_0 : i32, i32
  }
  func.func @transform_8(%arg0: i32) -> (i32, i32) {
    %c0_i32 = arith.constant 0 : i32
    %c0_i32_0 = arith.constant 0 : i32
    %c0_i32_1 = arith.constant 0 : i32
    return %c0_i32, %c0_i32_0 : i32, i32
  }
  func.func @transform_9(%arg0: i32) -> (i32, i32) {
    %c0_i32 = arith.constant 0 : i32
    %c0_i32_0 = arith.constant 0 : i32
    %c0_i32_1 = arith.constant 0 : i32
    return %c0_i32, %c0_i32_0 : i32, i32
  }
  func.func @transform_10(%arg0: i32) -> (i32, i32) {
    %c0_i32 = arith.constant 0 : i32
    %c0_i32_0 = arith.constant 0 : i32
    %c0_i32_1 = arith.constant 0 : i32
    return %c0_i32, %c0_i32_0 : i32, i32
  }
  func.func @transform_11(%arg0: i32) -> (i32, i32) {
    %c0_i32 = arith.constant 0 : i32
    %c0_i32_0 = arith.constant 0 : i32
    return %arg0, %c0_i32 : i32, i32
  }
}

</mosaic_0001>

<bundles_post_ra>
// kernel: tpu_custom_call.1
= control target key start
LH: loop header
LB: loop body
LE: loop exit
PB: predicated region body
PF: predicated region fallthrough
CT: control target
= control target key end

     0   :  { %16 = vsyncpa [#allocation3], 0  ;;  %s1282_s0 = inlined_call_operand.vmem [shape: f32[64,16], index: 0, kind: input, shape index: {}]   ;;  %s1283_s1 = inlined_call_operand.vmem [shape: bf16[16,128], index: 1, kind: input, shape index: {}]   ;;  %s1284_s2 = inlined_call_operand.vmem [shape: f32[1,128], index: 2, kind: input, shape index: {}]   ;;  %s1285_s3 = inlined_call_operand.vmem [shape: bf16[128,128], index: 3, kind: input, shape index: {}]   ;;  %s1286_s4 = inlined_call_operand.vmem [shape: f32[1,128], index: 4, kind: input, shape index: {}]   ;;  %s1287_s5 = inlined_call_operand.hbm [shape: bf16[128,128], index: 5, kind: input, shape index: {}]   ;;  %s1288_s6 = inlined_call_operand.vmem [shape: f32[1,128], index: 6, kind: input, shape index: {}]   ;;  %s1289_s7 = inlined_call_operand.hbm [shape: bf16[128,128], index: 7, kind: input, shape index: {}]   ;;  %s1290_s8 = inlined_call_operand.vmem [shape: f32[1,128], index: 8, kind: input, shape index: {}]   ;;  %s1291_s9 = inlined_call_operand.hbm [shape: bf16[128,128], index: 9, kind: input, shape index: {}]   ;;  %s1292_s10 = inlined_call_operand.vmem [shape: f32[1,128], index: 10, kind: input, shape index: {}]   ;;  %s1293_s11 = inlined_call_operand.hbm [shape: f32[64,128], index: 11, kind: output, shape index: {}]  }
   0x1   :  { %17 = vsyncpa [#allocation6], 0 }
   0x2   :  { %18 = vsyncpa [#allocation4], 0  ;;  %s1132_s17 = smov [#allocation5]   ;;  %s1133_s19 = smov [#allocation2]  }
   0x3   :  { %s48_s18 = sshll.u32 %s1132_s17, 4  ;;  %s34_s20 = sshll.u32 %s1133_s19, 4  ;;  %s49_s18 = int_to_ptr.vmem [resolvable:$true] %s48_s18  ;;  %s35_s20 = int_to_ptr.vmem [resolvable:$true] %s34_s20 }
   0x4   :  { %s1054_s21 = scalar_lea.vmem %s49_s18, 1024  ;;  %p1059_p1 = scmp.lt.s32.totalorder %s49_s18, %s49_s18 }
   0x5   :  { %p1055_p0 = scmp.ne.s32.totalorder %s49_s18, %s1054_s21  ;;  %p1060_p2 = scmp.lt.s32.totalorder %s1054_s21, %s1054_s21 }
   0x7   :  { %p1061_p3 = por %p1060_p2, %p1059_p1 }
   0x9   :  { %p1062_p4 = pnand %p1061_p3, %p1055_p0 }
   0xb   :  { %1065 = shalt.err (!%p1062_p4)
}
   0xc   :  { %s1134_s22 = smov 64   ;;  %s1135_s23 = smov 4  }
   0xd   :  { %54 = dma.hbm_to_vmem [thread:$0]  %s1289_s7, 1024, %s49_s18, [#allocation6], %s1134_s22, %s1134_s22, %s1135_s23  }
   0xe   :  { %s1074_s26 = scalar_lea.vmem %s35_s20, 1024  ;;  %p1079_p6 = scmp.lt.s32.totalorder %s35_s20, %s35_s20 }
   0xf   :  { %p1075_p5 = scmp.ne.s32.totalorder %s35_s20, %s1074_s26  ;;  %p1080_p7 = scmp.lt.s32.totalorder %s1074_s26, %s1074_s26 }
  0x11   :  { %p1081_p8 = por %p1080_p7, %p1079_p6 }
  0x13   :  { %p1082_p9 = pnand %p1081_p8, %p1075_p5 }
  0x15   :  { %1085 = shalt.err (!%p1082_p9)
}
  0x16   :  { %40 = dma.hbm_to_vmem [thread:$0]  %s1287_s5, 1024, %s35_s20, [#allocation3], %s1134_s22, %s1134_s22, %s1135_s23  }
  0x17   :  { %s1136_s29 = smov [#allocation7]  }
  0x18   :  { %s62_s30 = sshll.u32 %s1136_s29, 4  ;;  %s63_s30 = int_to_ptr.vmem [resolvable:$true] %s62_s30 }
  0x19   :  { %s1094_s12 = scalar_lea.vmem %s63_s30, 1024  ;;  %p1099_p11 = scmp.lt.s32.totalorder %s63_s30, %s63_s30 }
  0x1a   :  { %p1095_p10 = scmp.ne.s32.totalorder %s63_s30, %s1094_s12  ;;  %p1100_p12 = scmp.lt.s32.totalorder %s1094_s12, %s1094_s12 }
  0x1c   :  { %p1101_p13 = por %p1100_p12, %p1099_p11 }
  0x1e   :  { %p1102_p0 = pnand %p1101_p13, %p1095_p10 }
  0x20   :  { %1105 = shalt.err (!%p1102_p0)
}
  0x21   :  { %68 = dma.hbm_to_vmem [thread:$0]  %s1291_s9, 1024, %s63_s30, [#allocation6], %s1134_s22, %s1134_s22, %s1135_s23  }
  0x22   :  { %1126 = dma.done.wait [#allocation3], 1024  }
  0x23   :  { %1127 = vsyncadd [#allocation3], 4294966272 }
  0x24   :  { %1128 = dma.done.wait [#allocation6], 2048  }
  0x25   :  { %1129 = vsyncadd [#allocation6], 4294965248  ;;  %v1013_v0 = vld [vmem:[%s1283_s1] sm:$0xff]   ;;  %v82_v2 = vld [vmem:[%s1282_s0 + $0x8] sm:$0xff]  ;;  %vm108_vm0 = vcmask 130048   ;;  %s1137_s26 = smov [#allocation8]  }
  0x26   :  { %v81_v1 = vld [vmem:[%s1282_s0] sm:$0xff]  ;;  %v83_v3 = vld [vmem:[%s1282_s0 + $0x10] sm:$0xff]  ;;  %899 = vmatprep.subr.bf16.mxu0 %v1013_v0  ;;  %v84_v5 = vld [vmem:[%s1282_s0 + $0x18] sm:$0xff]  ;;  %s791_s27 = sshll.u32 %s1137_s26, 4  ;;  %s792_s27 = int_to_ptr.vmem [resolvable:$true] %s791_s27 }
  0x27   :  { %v89_v4 = vpack.c.bf16 %v82_v2, %v81_v1  ;;  %v85_v6 = vld [vmem:[%s1282_s0 + $0x20] sm:$0xff]  ;;  %v86_v7 = vld [vmem:[%s1282_s0 + $0x28] sm:$0xff]  ;;  %900 = vmatpush3.bf16.msra.mxu0 %v1013_v0  ;;  %v90_v8 = vpack.c.bf16 %v84_v5, %v83_v3  ;;  %v1014_v10 = vld [vmem:[%s1285_s3 + $0x38] sm:$0xff]   ;;  %p1111_p2 = scmp.lt.s32.totalorder %s792_s27, %s792_s27 }
  0x28   :  { %v91_v9 = vpack.c.bf16 %v86_v7, %v85_v6  ;;  %v1015_v11 = vld [vmem:[%s1285_s3 + $0x30] sm:$0xff]   ;;  %909 = vmatprep.subr.bf16.mxu1 %v1014_v10  ;;  %v88_v13 = vld [vmem:[%s1282_s0 + $0x38] sm:$0xff]  ;;  %v1016_v14 = vld [vmem:[%s1285_s3 + $0x28] sm:$0xff]  }
  0x29   :  { %901 = vmatprep.mubr.msk.bf16.mxu0 %vm108_vm0, %v89_v4  ;;  %v87_v12 = vld [vmem:[%s1282_s0 + $0x30] sm:$0xff]  ;;  %910 = vmatpush3.bf16.msra.mxu1 %v1014_v10  ;;  %v1017_v16 = vld [vmem:[%s1285_s3 + $0x20] sm:$0xff]   ;;  %v1018_v17 = vld [vmem:[%s1285_s3 + $0x18] sm:$0xff]  }
  0x2a   :  { %902 = vmatmul.mubr.msk.bf16.vlgmr.msra.gmra.mxu0 %vm108_vm0, %v90_v8  ;;  %911 = vmatprep.subr.bf16.mxu1 %v1015_v11  ;;  %v92_v15 = vpack.c.bf16 %v88_v13, %v87_v12  ;;  %v1019_v18 = vld [vmem:[%s1285_s3 + $0x10] sm:$0xff]   ;;  %v1020_v19 = vld [vmem:[%s1285_s3 + $0x8] sm:$0xff]   ;;  %v1021_v20 = vld [vmem:[%s1285_s3] sm:$0xff]  }
  0x2b   :  { %905 = vmatprep.mubr.msk.bf16.mxu0 %vm108_vm0, %v91_v9  ;;  %v1022_v21 = vld [vmem:[#allocation2 + $0x38] sm:$0xff]   ;;  %v1023_v22 = vld [vmem:[#allocation2 + $0x30] sm:$0xff]   ;;  %v1024_v23 = vld [vmem:[#allocation2 + $0x28] sm:$0xff]  }
  0x2c   :  { %933 = vmatprep.subr.bf16.mxu0 %v1022_v21  ;;  %v1025_v24 = vld [vmem:[#allocation2 + $0x20] sm:$0xff]   ;;  %v1026_v25 = vld [vmem:[#allocation2 + $0x18] sm:$0xff]   ;;  %v1027_v55 = vld [vmem:[#allocation2 + $0x10] sm:$0xff]  }
  0x2d   :  { %912 = vmatpush3.bf16.msra.mxu1 %v1015_v11  ;;  %934 = vmatpush3.bf16.msra.mxu0 %v1022_v21  ;;  %v804_v28 = vld [vmem:[%s1284_s2] ss:$0 sm:$0xff]  ;;  %v1028_v56 = vld [vmem:[#allocation2 + $0x8] sm:$0xff]   ;;  %v1030_v58 = vld [vmem:[#allocation5 + $0x38] sm:$0xff]  }
  0x2e   :  { %913 = vmatprep.subr.bf16.mxu1 %v1016_v14  ;;  %935 = vmatprep.subr.bf16.mxu0 %v1023_v22  ;;  %v1029_v57 = vld [vmem:[#allocation2] sm:$0xff]   ;;  %v1031_v59 = vld [vmem:[#allocation5 + $0x30] sm:$0xff]   ;;  %v1032_v60 = vld [vmem:[#allocation5 + $0x28] sm:$0xff]  }
  0x2f   :  { %v1033_v61 = vld [vmem:[#allocation5 + $0x20] sm:$0xff]   ;;  %v1034_v62 = vld [vmem:[#allocation5 + $0x18] sm:$0xff]  }
  0x30   :  { %v810_v1 = vld [vmem:[%s1286_s4] ss:$0 sm:$0xff] }
  0x31   :  { %914 = vmatpush3.bf16.msra.mxu1 %v1016_v14  ;;  %936 = vmatpush3.bf16.msra.mxu0 %v1023_v22 }
  0x32   :  { %906 = vmatmul.mubr.msk.bf16.gmra.mxu0 %vm108_vm0, %v92_v15  ;;  %915 = vmatprep.subr.bf16.mxu1 %v1017_v16 }
  0x33   :  { %937 = vmatprep.subr.bf16.mxu0 %v1024_v23 }
  0x35   :  { %916 = vmatpush3.bf16.msra.mxu1 %v1017_v16  ;;  %938 = vmatpush3.bf16.msra.mxu0 %v1024_v23 }
  0x36   :  { %917 = vmatprep.subr.bf16.mxu1 %v1018_v17  ;;  %939 = vmatprep.subr.bf16.mxu0 %v1025_v24 }
  0x39   :  { %918 = vmatpush3.bf16.msra.mxu1 %v1018_v17  ;;  %940 = vmatpush3.bf16.msra.mxu0 %v1025_v24 }
  0x3a   :  { %919 = vmatprep.subr.bf16.mxu1 %v1019_v18  ;;  %941 = vmatprep.subr.bf16.mxu0 %v1026_v25 }
  0x3d   :  { %920 = vmatpush3.bf16.msra.mxu1 %v1019_v18  ;;  %942 = vmatpush3.bf16.msra.mxu0 %v1026_v25 }
  0x3e   :  { %921 = vmatprep.subr.bf16.mxu1 %v1020_v19  ;;  %943 = vmatprep.subr.bf16.mxu0 %v1027_v55 }
  0x41   :  { %922 = vmatpush3.bf16.msra.mxu1 %v1020_v19  ;;  %944 = vmatpush3.bf16.msra.mxu0 %v1027_v55 }
  0x42   :  { %923 = vmatprep.subr.bf16.mxu1 %v1021_v20  ;;  %945 = vmatprep.subr.bf16.mxu0 %v1028_v56 }
  0x45   :  { %924 = vmatpush3.bf16.msra.mxu1 %v1021_v20  ;;  %946 = vmatpush3.bf16.msra.mxu0 %v1028_v56 }
  0x46   :  { %947 = vmatprep.subr.bf16.mxu0 %v1029_v57  ;;  %957 = vmatprep.subr.bf16.mxu1 %v1030_v58 }
  0x49   :  { %948 = vmatpush3.bf16.msra.mxu0 %v1029_v57 }
  0xea   :  { %v903_v26 = vpop.f32.mrf.mxu0 }
  0xeb   :  { %v164_v32 = vadd.f32 %v903_v26, %v804_v28 }
  0xec   :  { %v155_v27 = vpop.f32.mrf.mxu0 }
  0xed   :  { %v156_v30 = vadd.f32 %v804_v28, %v155_v27  ;;  %v188_v39 = vmax.f32 %v164_v32, 0.0  ;;  %v1039_v32 = vld [vmem:[#allocation7 + $0x30] sm:$0xff]  }
  0xee   :  { %v904_v29 = vpop.f32.mrf.mxu0 }
  0xef   :  { %v167_v31 = vadd.f32 %v904_v29, %v804_v28  ;;  %v186_v37 = vmax.f32 %v156_v30, 0.0  ;;  %v1036_v29 = vld [vmem:[#allocation5 + $0x8] sm:$0xff]   ;;  %v1037_v30 = vld [vmem:[#allocation5] sm:$0xff]  }
  0xf0   :  { %v158_v33 = vpop.f32.mrf.mxu0 }
  0xf1   :  { %v159_v34 = vadd.f32 %v804_v28, %v158_v33  ;;  %v189_v35 = vmax.f32 %v167_v31, 0.0  ;;  %v1038_v31 = vld [vmem:[#allocation7 + $0x38] sm:$0xff]   ;;  %v1040_v33 = vld [vmem:[#allocation7 + $0x28] sm:$0xff]  }
  0xf2   :  { %v907_v36 = vpop.f32.mrf.mxu0  ;;  %981 = vmatprep.subr.bf16.mxu0 %v1038_v31 }
  0xf3   :  { %v187_v38 = vmax.f32 %v159_v34, 0.0  ;;  %v195_v42 = vpack.c.bf16 %v189_v35, %v188_v39  ;;  %v180_v46 = vadd.f32 %v907_v36, %v804_v28  ;;  %v1041_v34 = vld [vmem:[#allocation7 + $0x20] sm:$0xff]   ;;  %v1042_v35 = vld [vmem:[#allocation7 + $0x18] sm:$0xff]  }
  0xf4   :  { %v171_v40 = vpop.f32.mrf.mxu0 }
  0xf5   :  { %v194_v41 = vpack.c.bf16 %v187_v38, %v186_v37  ;;  %v172_v44 = vadd.f32 %v804_v28, %v171_v40  ;;  %v192_v52 = vmax.f32 %v180_v46, 0.0  ;;  %v819_v38 = vld [vmem:[%s1288_s6] ss:$0 sm:$0xff] }
  0xf6   :  { %v908_v43 = vpop.f32.mrf.mxu0 }
  0xf7   :  { %v183_v45 = vadd.f32 %v908_v43, %v804_v28  ;;  %925 = vmatprep.mubr.bf16.mxu1 %v194_v41  ;;  %v190_v50 = vmax.f32 %v172_v44, 0.0 }
  0xf8   :  { %v174_v47 = vpop.f32.mrf.mxu0  ;;  %926 = vmatmul.mubr.bf16.vlgmr.msra.gmra.mxu1 %v195_v42 }
  0xf9   :  { %v175_v48 = vadd.f32 %v804_v28, %v174_v47  ;;  %v193_v49 = vmax.f32 %v183_v45, 0.0  ;;  %958 = vmatpush3.bf16.msra.mxu1 %v1030_v58  ;;  %v1035_v28 = vld [vmem:[#allocation5 + $0x10] sm:$0xff]  }
  0xfa   :  { %959 = vmatprep.subr.bf16.mxu1 %v1031_v59 }
  0xfb   :  { %v191_v51 = vmax.f32 %v175_v48, 0.0  ;;  %v197_v54 = vpack.c.bf16 %v193_v49, %v192_v52 }
  0xfd   :  { %v196_v53 = vpack.c.bf16 %v191_v51, %v190_v50  ;;  %960 = vmatpush3.bf16.msra.mxu1 %v1031_v59 }
  0xfe   :  { %961 = vmatprep.subr.bf16.mxu1 %v1032_v60 }
  0xff   :  { %929 = vmatprep.mubr.bf16.mxu1 %v196_v53 }
 0x100   :  { %930 = vmatmul.mubr.bf16.gmra.mxu1 %v197_v54 }
 0x101   :  { %962 = vmatpush3.bf16.msra.mxu1 %v1032_v60 }
 0x102   :  { %963 = vmatprep.subr.bf16.mxu1 %v1033_v61 }
 0x105   :  { %964 = vmatpush3.bf16.msra.mxu1 %v1033_v61 }
 0x106   :  { %965 = vmatprep.subr.bf16.mxu1 %v1034_v62 }
 0x109   :  { %966 = vmatpush3.bf16.msra.mxu1 %v1034_v62 }
 0x10a   :  { %967 = vmatprep.subr.bf16.mxu1 %v1035_v28 }
 0x10d   :  { %968 = vmatpush3.bf16.msra.mxu1 %v1035_v28 }
 0x10e   :  { %969 = vmatprep.subr.bf16.mxu1 %v1036_v29 }
 0x111   :  { %970 = vmatpush3.bf16.msra.mxu1 %v1036_v29 }
 0x112   :  { %971 = vmatprep.subr.bf16.mxu1 %v1037_v30 }
 0x115   :  { %972 = vmatpush3.bf16.msra.mxu1 %v1037_v30 }
 0x1b8   :  { %v927_v63 = vpop.f32.mrf.mxu1 }
 0x1b9   :  { %v312_v5 = vadd.f32 %v927_v63, %v810_v1 }
 0x1ba   :  { %v303_v0 = vpop.f32.mrf.mxu1 }
 0x1bb   :  { %v304_v3 = vadd.f32 %v810_v1, %v303_v0  ;;  %v336_v12 = vmax.f32 %v312_v5, 0.0 }
 0x1bc   :  { %v928_v2 = vpop.f32.mrf.mxu1 }
 0x1bd   :  { %v315_v4 = vadd.f32 %v928_v2, %v810_v1  ;;  %v334_v10 = vmax.f32 %v304_v3, 0.0  ;;  %v1044_v2 = vld [vmem:[#allocation7 + $0x8] sm:$0xff]   ;;  %v1045_v3 = vld [vmem:[#allocation7] sm:$0xff]  }
 0x1be   :  { %v306_v6 = vpop.f32.mrf.mxu1 }
 0x1bf   :  { %v307_v7 = vadd.f32 %v810_v1, %v306_v6  ;;  %v337_v8 = vmax.f32 %v315_v4, 0.0  ;;  %v828_v6 = vld [vmem:[%s1290_s8] ss:$0 sm:$0xff] }
 0x1c0   :  { %v931_v9 = vpop.f32.mrf.mxu1 }
 0x1c1   :  { %v335_v11 = vmax.f32 %v307_v7, 0.0  ;;  %v343_v15 = vpack.c.bf16 %v337_v8, %v336_v12  ;;  %v328_v19 = vadd.f32 %v931_v9, %v810_v1 }
 0x1c2   :  { %v319_v13 = vpop.f32.mrf.mxu1 }
 0x1c3   :  { %v342_v14 = vpack.c.bf16 %v335_v11, %v334_v10  ;;  %v320_v17 = vadd.f32 %v810_v1, %v319_v13  ;;  %v340_v25 = vmax.f32 %v328_v19, 0.0 }
 0x1c4   :  { %v932_v16 = vpop.f32.mrf.mxu1 }
 0x1c5   :  { %v331_v18 = vadd.f32 %v932_v16, %v810_v1  ;;  %949 = vmatprep.mubr.bf16.mxu0 %v342_v14  ;;  %v338_v23 = vmax.f32 %v320_v17, 0.0 }
 0x1c6   :  { %v322_v20 = vpop.f32.mrf.mxu1  ;;  %950 = vmatmul.mubr.bf16.vlgmr.msra.gmra.mxu0 %v343_v15 }
 0x1c7   :  { %v323_v21 = vadd.f32 %v810_v1, %v322_v20  ;;  %v341_v22 = vmax.f32 %v331_v18, 0.0  ;;  %982 = vmatpush3.bf16.msra.mxu0 %v1038_v31  ;;  %v1043_v1 = vld [vmem:[#allocation7 + $0x10] sm:$0xff]  }
 0x1c8   :  { %983 = vmatprep.subr.bf16.mxu0 %v1039_v32 }
 0x1c9   :  { %v339_v24 = vmax.f32 %v323_v21, 0.0  ;;  %v345_v27 = vpack.c.bf16 %v341_v22, %v340_v25 }
 0x1cb   :  { %v344_v26 = vpack.c.bf16 %v339_v24, %v338_v23  ;;  %984 = vmatpush3.bf16.msra.mxu0 %v1039_v32 }
 0x1cc   :  { %985 = vmatprep.subr.bf16.mxu0 %v1040_v33 }
 0x1cd   :  { %953 = vmatprep.mubr.bf16.mxu0 %v344_v26 }
 0x1ce   :  { %954 = vmatmul.mubr.bf16.gmra.mxu0 %v345_v27 }
 0x1cf   :  { %986 = vmatpush3.bf16.msra.mxu0 %v1040_v33  ;;  %v837_v33 = vld [vmem:[%s1292_s10] ss:$0 sm:$0xff]  ;;  %s1106_s10 = scalar_lea.vmem %s792_s27, 1024 }
 0x1d0   :  { %987 = vmatprep.subr.bf16.mxu0 %v1041_v34  ;;  %p1107_p1 = scmp.ne.s32.totalorder %s792_s27, %s1106_s10  ;;  %p1112_p3 = scmp.lt.s32.totalorder %s1106_s10, %s1106_s10 }
 0x1d2   :  { %p1113_p4 = por %p1112_p3, %p1111_p2 }
 0x1d3   :  { %988 = vmatpush3.bf16.msra.mxu0 %v1041_v34 }
 0x1d4   :  { %989 = vmatprep.subr.bf16.mxu0 %v1042_v35  ;;  %p1114_p5 = pnand %p1113_p4, %p1107_p1 }
 0x1d7   :  { %990 = vmatpush3.bf16.msra.mxu0 %v1042_v35 }
 0x1d8   :  { %991 = vmatprep.subr.bf16.mxu0 %v1043_v1 }
 0x1db   :  { %992 = vmatpush3.bf16.msra.mxu0 %v1043_v1 }
 0x1dc   :  { %993 = vmatprep.subr.bf16.mxu0 %v1044_v2 }
 0x1df   :  { %994 = vmatpush3.bf16.msra.mxu0 %v1044_v2 }
 0x1e0   :  { %995 = vmatprep.subr.bf16.mxu0 %v1045_v3 }
 0x1e3   :  { %996 = vmatpush3.bf16.msra.mxu0 %v1045_v3 }
 0x286   :  { %v951_v36 = vpop.f32.mrf.mxu0 }
 0x287   :  { %v460_v42 = vadd.f32 %v951_v36, %v819_v38 }
 0x288   :  { %v451_v37 = vpop.f32.mrf.mxu0 }
 0x289   :  { %v452_v40 = vadd.f32 %v819_v38, %v451_v37  ;;  %v484_v49 = vmax.f32 %v460_v42, 0.0 }
 0x28a   :  { %v952_v39 = vpop.f32.mrf.mxu0 }
 0x28b   :  { %v463_v41 = vadd.f32 %v952_v39, %v819_v38  ;;  %v482_v47 = vmax.f32 %v452_v40, 0.0 }
 0x28c   :  { %v454_v43 = vpop.f32.mrf.mxu0 }
 0x28d   :  { %v455_v44 = vadd.f32 %v819_v38, %v454_v43  ;;  %v485_v45 = vmax.f32 %v463_v41, 0.0 }
 0x28e   :  { %v955_v46 = vpop.f32.mrf.mxu0 }
 0x28f   :  { %v483_v48 = vmax.f32 %v455_v44, 0.0  ;;  %v491_v52 = vpack.c.bf16 %v485_v45, %v484_v49  ;;  %v476_v56 = vadd.f32 %v955_v46, %v819_v38 }
 0x290   :  { %v467_v50 = vpop.f32.mrf.mxu0 }
 0x291   :  { %v490_v51 = vpack.c.bf16 %v483_v48, %v482_v47  ;;  %v468_v54 = vadd.f32 %v819_v38, %v467_v50  ;;  %v488_v62 = vmax.f32 %v476_v56, 0.0 }
 0x292   :  { %v956_v53 = vpop.f32.mrf.mxu0 }
 0x293   :  { %v479_v55 = vadd.f32 %v956_v53, %v819_v38  ;;  %973 = vmatprep.mubr.bf16.mxu1 %v490_v51  ;;  %v486_v60 = vmax.f32 %v468_v54, 0.0 }
 0x294   :  { %v470_v57 = vpop.f32.mrf.mxu0  ;;  %974 = vmatmul.mubr.bf16.vlgmr.msra.gmra.mxu1 %v491_v52 }
 0x295   :  { %v471_v58 = vadd.f32 %v819_v38, %v470_v57  ;;  %v489_v59 = vmax.f32 %v479_v55, 0.0 }
 0x297   :  { %v487_v61 = vmax.f32 %v471_v58, 0.0  ;;  %v493_v0 = vpack.c.bf16 %v489_v59, %v488_v62 }
 0x299   :  { %v492_v63 = vpack.c.bf16 %v487_v61, %v486_v60 }
 0x29b   :  { %977 = vmatprep.mubr.bf16.mxu1 %v492_v63 }
 0x29c   :  { %978 = vmatmul.mubr.bf16.gmra.mxu1 %v493_v0 }
 0x354   :  { %v975_v4 = vpop.f32.mrf.mxu1 }
 0x355   :  { %v608_v10 = vadd.f32 %v975_v4, %v828_v6 }
 0x356   :  { %v599_v5 = vpop.f32.mrf.mxu1 }
 0x357   :  { %v600_v8 = vadd.f32 %v828_v6, %v599_v5  ;;  %v632_v17 = vmax.f32 %v608_v10, 0.0 }
 0x358   :  { %v976_v7 = vpop.f32.mrf.mxu1 }
 0x359   :  { %v611_v9 = vadd.f32 %v976_v7, %v828_v6  ;;  %v630_v15 = vmax.f32 %v600_v8, 0.0 }
 0x35a   :  { %v602_v11 = vpop.f32.mrf.mxu1 }
 0x35b   :  { %v603_v12 = vadd.f32 %v828_v6, %v602_v11  ;;  %v633_v13 = vmax.f32 %v611_v9, 0.0 }
 0x35c   :  { %v979_v14 = vpop.f32.mrf.mxu1 }
 0x35d   :  { %v631_v16 = vmax.f32 %v603_v12, 0.0  ;;  %v639_v20 = vpack.c.bf16 %v633_v13, %v632_v17  ;;  %v624_v24 = vadd.f32 %v979_v14, %v828_v6 }
 0x35e   :  { %v615_v18 = vpop.f32.mrf.mxu1 }
 0x35f   :  { %v638_v19 = vpack.c.bf16 %v631_v16, %v630_v15  ;;  %v616_v22 = vadd.f32 %v828_v6, %v615_v18  ;;  %v636_v30 = vmax.f32 %v624_v24, 0.0 }
 0x360   :  { %v980_v21 = vpop.f32.mrf.mxu1 }
 0x361   :  { %v627_v23 = vadd.f32 %v980_v21, %v828_v6  ;;  %997 = vmatprep.mubr.bf16.mxu0 %v638_v19  ;;  %v634_v28 = vmax.f32 %v616_v22, 0.0 }
 0x362   :  { %v618_v25 = vpop.f32.mrf.mxu1  ;;  %998 = vmatmul.mubr.bf16.vlgmr.msra.gmra.mxu0 %v639_v20 }
 0x363   :  { %v619_v26 = vadd.f32 %v828_v6, %v618_v25  ;;  %v637_v27 = vmax.f32 %v627_v23, 0.0 }
 0x365   :  { %v635_v29 = vmax.f32 %v619_v26, 0.0  ;;  %v641_v32 = vpack.c.bf16 %v637_v27, %v636_v30 }
 0x367   :  { %v640_v31 = vpack.c.bf16 %v635_v29, %v634_v28 }
 0x369   :  { %1001 = vmatprep.mubr.bf16.mxu0 %v640_v31 }
 0x36a   :  { %1002 = vmatmul.mubr.bf16.gmra.mxu0 %v641_v32 }
 0x422   :  { %v999_v34 = vpop.f32.mrf.mxu0 }
 0x423   :  { %v756_v35 = vadd.f32 %v999_v34, %v837_v33 }
 0x424   :  { %v747_v36 = vpop.f32.mrf.mxu0 }
 0x425   :  { %780 = vst [vmem:[#allocation8 + $0x10] sm:$0xff] %v756_v35  ;;  %v748_v37 = vadd.f32 %v837_v33, %v747_v36 }
 0x426   :  { %v1000_v38 = vpop.f32.mrf.mxu0 }
 0x427   :  { %778 = vst [vmem:[#allocation8] sm:$0xff] %v748_v37  ;;  %v759_v39 = vadd.f32 %v1000_v38, %v837_v33 }
 0x428   :  { %v750_v40 = vpop.f32.mrf.mxu0 }
 0x429   :  { %781 = vst [vmem:[#allocation8 + $0x18] sm:$0xff] %v759_v39  ;;  %v751_v41 = vadd.f32 %v837_v33, %v750_v40 }
 0x42a   :  { %v1003_v42 = vpop.f32.mrf.mxu0 }
 0x42b   :  { %779 = vst [vmem:[#allocation8 + $0x8] sm:$0xff] %v751_v41  ;;  %v772_v43 = vadd.f32 %v1003_v42, %v837_v33 }
 0x42c   :  { %v763_v44 = vpop.f32.mrf.mxu0 }
 0x42d   :  { %784 = vst [vmem:[#allocation8 + $0x30] sm:$0xff] %v772_v43  ;;  %v764_v45 = vadd.f32 %v837_v33, %v763_v44 }
 0x42e   :  { %v1004_v46 = vpop.f32.mrf.mxu0 }
 0x42f   :  { %782 = vst [vmem:[#allocation8 + $0x20] sm:$0xff] %v764_v45  ;;  %v775_v47 = vadd.f32 %v1004_v46, %v837_v33 }
 0x430   :  { %v766_v48 = vpop.f32.mrf.mxu0 }
 0x431   :  { %785 = vst [vmem:[#allocation8 + $0x38] sm:$0xff] %v775_v47  ;;  %v767_v49 = vadd.f32 %v837_v33, %v766_v48 }
 0x433   :  { %783 = vst [vmem:[#allocation8 + $0x28] sm:$0xff] %v767_v49 }
 0x434   :  { %1117 = shalt.err (!%p1114_p5)
}
 0x435   :  { %s1138_s28 = smov 128   ;;  %s1139_s29 = smov 8  }
 0x436   :  { %797 = dma.vmem_to_hbm [thread:$0]  %s792_s27, 1024, %s1293_s11, [#allocation4], %s1138_s28, %s1138_s28, %s1139_s29  }
 0x437   :  { %1130 = dma.done.wait [#allocation4], 1024  }
 0x438   :  { %1131 = vsyncadd [#allocation4], 4294966272 }
 0x439   :  { %801 = vsyncpa [#allocation3], 1 }
 0x43a   :  { %802 = vsyncpa [#allocation6], 1 }
 0x43b   :  { %803 = vsyncpa [#allocation4], 1 }

</bundles_post_ra>
